<compile_context>
chip_gen: v5e
topology: v5e:2x2
jax: 0.10.0
libtpu: 0.0.40
codegen_flags: <defaults>
</compile_context>

<pallas_src>
from functools import partial

import jax
import jax.numpy as jnp
from jax.experimental import pallas as pl
from jax.experimental.pallas import tpu as pltpu


# ---------------------------------------------------------------------------
# Kernel: B Terms per grid step, packed operand (8, Bt), output (1, Bt).
# ---------------------------------------------------------------------------
def _term_kernel(p_ref, o_ref, *, has_neighbor: bool):
    # Static row slices on the Ref are free.
    r0 = p_ref[0:1, :]                       # (1, Bt)
    r1 = p_ref[1:2, :]
    r2 = p_ref[2:3, :]
    w = p_ref[3:4, :]
    v = p_ref[4:5, :]

    # 3-way softmax with explicit row arithmetic (VPU only, no cross-lane XLU).
    m = jnp.maximum(jnp.maximum(r0, r1), r2)
    e0 = jnp.exp(r0 - m)
    e1 = jnp.exp(r1 - m)
    e2 = jnp.exp(r2 - m)
    inv = pl.reciprocal(e0 + e1 + e2, approx=False)   # exact; approx=True -> EUP

    # Folded sign:  (rw0 - rw1) * w*v  [+ rw2 * nw*nv]
    acc = (e0 - e1) * (w * v)
    if has_neighbor:
        nw = p_ref[5:6, :]
        nv = p_ref[6:7, :]
        acc = acc + e2 * (nw * nv)

    o_ref[...] = acc * inv                   # lane-dense (1, Bt) store


def _round_up(x, m):
    return ((x + m - 1) // m) * m


# ---------------------------------------------------------------------------
# Batched forward: B Terms at once (this is where a Pallas kernel pays off).
#   route:  (B, 3)    weight, value: (B,)    neighbor_*: (B,) or None
# Returns (B,) float32.
# ---------------------------------------------------------------------------
def term_forward_batched(route, weight, value,
                         neighbor_weight=None, neighbor_value=None,
                         *, max_block=1024):
    route = jnp.asarray(route, jnp.float32).reshape(-1, 3)
    weight = jnp.asarray(weight, jnp.float32).reshape(-1)
    value = jnp.asarray(value, jnp.float32).reshape(-1)
    B = route.shape[0]
    has_neighbor = neighbor_weight is not None

    # Lane-dense tiling: block multiple of 128, output last dim multiple of 128.
    block_b = min(max_block, _round_up(B, 128))
    b_pad = _round_up(B, block_b)

    # Single packed (8, B_pad) operand -> one DMA / one double-buffered tile.
    packed = jnp.zeros((8, b_pad), jnp.float32)
    packed = packed.at[0:3, :B].set(route.T)
    packed = packed.at[3, :B].set(weight)
    packed = packed.at[4, :B].set(value)
    if has_neighbor:
        packed = packed.at[5, :B].set(jnp.asarray(neighbor_weight, jnp.float32).reshape(-1))
        packed = packed.at[6, :B].set(jnp.asarray(neighbor_value, jnp.float32).reshape(-1))

    out = pl.pallas_call(
        partial(_term_kernel, has_neighbor=has_neighbor),
        out_shape=jax.ShapeDtypeStruct((1, b_pad), jnp.float32),
        grid=(b_pad // block_b,),
        in_specs=[pl.BlockSpec((8, block_b), lambda i: (0, i))],
        out_specs=pl.BlockSpec((1, block_b), lambda i: (0, i)),
        compiler_params=pltpu.CompilerParams(
            dimension_semantics=("parallel",)),   # dual-TC sharding on v7x
    )(packed)
    return out[0, :B]


# ---------------------------------------------------------------------------
# Single-Term forward matching the PyTorch module signature.
#   params = (route(3,), weight(1,), value(1,)); neighbor_params same or None.
#   `target` is accepted but unused (as in the PyTorch forward).
# ---------------------------------------------------------------------------
def term_forward(params, target, neighbor_params=None):
    route, weight, value = params
    if neighbor_params is None:
        out = term_forward_batched(route.reshape(1, 3), weight, value)
    else:
        _, nw, nv = neighbor_params
        out = term_forward_batched(route.reshape(1, 3), weight, value, nw, nv)
    return out.reshape(1)   # matches PyTorch output shape (1,)


# ---------------------------------------------------------------------------
# Pure-JAX references.
# ---------------------------------------------------------------------------
def term_forward_ref(params, target, neighbor_params=None):
    route, weight, value = params
    rw = jax.nn.softmax(route)
    fwd = rw[0] * weight * value
    bwd = -rw[1] * weight * value
    if neighbor_params is None:
        side = 0.0
    else:
        _, nw, nv = neighbor_params
        side = rw[2] * nw * nv
    return fwd + bwd + side


def term_forward_batched_ref(route, weight, value, nw=None, nv=None):
    rw = jax.nn.softmax(route, axis=-1)                      # (B, 3)
    out = rw[:, 0] * weight * value - rw[:, 1] * weight * value
    if nw is not None:
        out = out + rw[:, 2] * nw * nv
    return out


def init_term_params(key):
    k1, k2, k3 = jax.random.split(key, 3)
    value = jax.random.normal(k1, (1,), jnp.float32)
    weight = jax.random.normal(k2, (1,), jnp.float32)
    route = jax.random.normal(k3, (3,), jnp.float32)
    return (route, weight, value)


if __name__ == "__main__":
    key = jax.random.PRNGKey(0)
    kp, kn, kt, kb = jax.random.split(key, 4)

    # ---- batched: 256 Terms (the case the kernel is designed for) ----------
    B = 256
    kb1, kb2, kb3, kb4, kb5 = jax.random.split(kb, 5)
    routes = jax.random.normal(kb1, (B, 3), jnp.float32)
    weights = jax.random.normal(kb2, (B,), jnp.float32)
    values = jax.random.normal(kb3, (B,), jnp.float32)
    n_weights = jax.random.normal(kb4, (B,), jnp.float32)
    n_values = jax.random.normal(kb5, (B,), jnp.float32)

    out_bn = term_forward_batched(routes, weights, values, n_weights, n_values)
    jax.block_until_ready(out_bn)
    ref_bn = term_forward_batched_ref(routes, weights, values, n_weights, n_values)

    out_b0 = term_forward_batched(routes, weights, values)
    jax.block_until_ready(out_b0)
    ref_b0 = term_forward_batched_ref(routes, weights, values)

    assert out_bn.shape == (B,) and out_b0.shape == (B,)
    assert jnp.allclose(out_bn, ref_bn, atol=1e-5, rtol=1e-5)
    assert jnp.allclose(out_b0, ref_b0, atol=1e-5, rtol=1e-5)

    # ---- single Term, PyTorch-style signature -------------------------------
    params = init_term_params(kp)          # this Term
    neighbor = init_term_params(kn)        # a neighbor Term
    # `target` is unused by the forward pass; provide a small NCHW tensor anyway.
    target = jax.random.normal(kt, (2, 4, 16, 16), jnp.float32)

    out_n = term_forward(params, target, neighbor)
    jax.block_until_ready(out_n)
    ref_n = term_forward_ref(params, target, neighbor)

    out_0 = term_forward(params, target, None)
    jax.block_until_ready(out_0)
    ref_0 = term_forward_ref(params, target, None)

    assert out_n.shape == (1,) and out_0.shape == (1,)
    assert jnp.allclose(out_n, ref_n, atol=1e-5, rtol=1e-5)
    assert jnp.allclose(out_0, ref_0, atol=1e-5, rtol=1e-5)

    print("KERNEL_OK")
</pallas_src>

<mosaic_0001>
module attributes {stable_mosaic.version = 11 : i64} {
  func.func @_term_kernel(%arg0: i32, %arg1: memref<8x256xf32, #tpu.memory_space<vmem>>, %arg2: memref<1x256xf32, #tpu.memory_space<vmem>>) attributes {dimension_semantics = [#tpu.dimension_semantics<parallel>], iteration_bounds = array<i64: 1>, scalar_prefetch = 0 : i64, scratch_operands = 0 : i64, tpu.core_type = #tpu.core_type<tc>, window_params = [{transform_indices = @transform_0, window_bounds = array<i64: 8, 256>}, {transform_indices = @transform_1, window_bounds = array<i64: 1, 256>}]} {
    %c0 = arith.constant 0 : index
    %c0_0 = arith.constant 0 : index
    %0 = vector.load %arg1[%c0, %c0_0] : memref<8x256xf32, #tpu.memory_space<vmem>>, vector<1x256xf32>
    %c1 = arith.constant 1 : index
    %c0_1 = arith.constant 0 : index
    %1 = vector.load %arg1[%c1, %c0_1] : memref<8x256xf32, #tpu.memory_space<vmem>>, vector<1x256xf32>
    %c2 = arith.constant 2 : index
    %c0_2 = arith.constant 0 : index
    %2 = vector.load %arg1[%c2, %c0_2] : memref<8x256xf32, #tpu.memory_space<vmem>>, vector<1x256xf32>
    %c3 = arith.constant 3 : index
    %c0_3 = arith.constant 0 : index
    %3 = vector.load %arg1[%c3, %c0_3] : memref<8x256xf32, #tpu.memory_space<vmem>>, vector<1x256xf32>
    %c4 = arith.constant 4 : index
    %c0_4 = arith.constant 0 : index
    %4 = vector.load %arg1[%c4, %c0_4] : memref<8x256xf32, #tpu.memory_space<vmem>>, vector<1x256xf32>
    %5 = arith.maximumf %0, %1 : vector<1x256xf32>
    %6 = arith.maximumf %5, %2 : vector<1x256xf32>
    %7 = arith.subf %0, %6 : vector<1x256xf32>
    %8 = math.exp %7 : vector<1x256xf32>
    %9 = arith.subf %1, %6 : vector<1x256xf32>
    %10 = math.exp %9 : vector<1x256xf32>
    %11 = arith.subf %2, %6 : vector<1x256xf32>
    %12 = math.exp %11 : vector<1x256xf32>
    %13 = arith.addf %8, %10 : vector<1x256xf32>
    %14 = arith.addf %13, %12 : vector<1x256xf32>
    %15 = tpu.reciprocal %14 : vector<1x256xf32> -> vector<1x256xf32>
    %16 = arith.subf %8, %10 : vector<1x256xf32>
    %17 = arith.mulf %3, %4 : vector<1x256xf32>
    %18 = arith.mulf %16, %17 : vector<1x256xf32>
    %c5 = arith.constant 5 : index
    %c0_5 = arith.constant 0 : index
    %19 = vector.load %arg1[%c5, %c0_5] : memref<8x256xf32, #tpu.memory_space<vmem>>, vector<1x256xf32>
    %c6 = arith.constant 6 : index
    %c0_6 = arith.constant 0 : index
    %20 = vector.load %arg1[%c6, %c0_6] : memref<8x256xf32, #tpu.memory_space<vmem>>, vector<1x256xf32>
    %21 = arith.mulf %19, %20 : vector<1x256xf32>
    %22 = arith.mulf %12, %21 : vector<1x256xf32>
    %23 = arith.addf %18, %22 : vector<1x256xf32>
    %24 = arith.mulf %23, %15 : vector<1x256xf32>
    %c0_7 = arith.constant 0 : index
    %c0_8 = arith.constant 0 : index
    %25 = vector.load %arg2[%c0_7, %c0_8] : memref<1x256xf32, #tpu.memory_space<vmem>>, vector<1x256xf32>
    tpu.vector_store %arg2[%c0_7, %c0_8], %24 {strides = array<i32>} : memref<1x256xf32, #tpu.memory_space<vmem>>, vector<1x256xf32>,
    return
  }
  func.func @transform_0(%arg0: i32) -> (i32, i32) {
    %c0_i32 = arith.constant 0 : i32
    %c0_i32_0 = arith.constant 0 : i32
    return %c0_i32, %arg0 : i32, i32
  }
  func.func @transform_1(%arg0: i32) -> (i32, i32) {
    %c0_i32 = arith.constant 0 : i32
    %c0_i32_0 = arith.constant 0 : i32
    return %c0_i32, %arg0 : i32, i32
  }
}

</mosaic_0001>

<bundles_post_ra>
// kernel: tpu_custom_call.1
= control target key start
LH: loop header
LB: loop body
LE: loop exit
PB: predicated region body
PF: predicated region fallthrough
CT: control target
= control target key end

     0   :  { %6 = vsyncpa [#allocation3], 0  ;;  %s172_s0 = inlined_call_operand.hbm [shape: f32[8,256], index: 0, kind: input, shape index: {}]   ;;  %s173_s1 = inlined_call_operand.hbm [shape: f32[1,256], index: 1, kind: output, shape index: {}]  }
   0x1   :  { %7 = vsyncpa [#allocation4], 0  ;;  %s13_s8 = sshll.u32 %s172_s0, 4  ;;  %s154_s9 = smov [#allocation2]   ;;  %s14_s8 = int_to_ptr.hbm [resolvable:$true] %s13_s8 }
   0x2   :  { %s15_s10 = sshll.u32 %s154_s9, 4  ;;  %s16_s10 = int_to_ptr.vmem [resolvable:$true] %s15_s10 }
   0x3   :  { %18 = dma.hbm_to_vmem [thread:$0]  %s14_s8, 256, %s16_s10, [#allocation3]  }
   0x4   :  { %150 = dma.done.wait [#allocation3], 256  }
   0x5   :  { %151 = vsyncadd [#allocation3], 4294967040  ;;  %v23_v0 = vld [vmem:[#allocation2] ss:$8 sm:$0x3]  ;;  %v70_v32 = vlaneseq  ;;  %s155_s0 = smov [#allocation5]  }
   0x6   :  { %v25_v1 = vld [vmem:[#allocation2 + $0x1] ss:$8 sm:$0x3]  ;;  %v27_v2 = vld [vmem:[#allocation2 + $0x2] ss:$8 sm:$0x3] }
   0x7   :  { %v32_v3 = vmax.f32 %v23_v0, %v25_v1  ;;  %v29_v16 = vld [vmem:[#allocation2 + $0x3] ss:$8 sm:$0x3]  ;;  %v31_v17 = vld [vmem:[#allocation2 + $0x4] ss:$8 sm:$0x3] }
   0x8   :  { %v63_v18 = vld [vmem:[#allocation2 + $0x5] ss:$8 sm:$0x3]  ;;  %v65_v19 = vld [vmem:[#allocation2 + $0x6] ss:$8 sm:$0x3]  ;;  %v60_v21 = vmul.f32 %v31_v17, %v29_v16 }
   0x9   :  { %v33_v4 = vmax.f32 %v32_v3, %v27_v2  ;;  %v66_v22 = vmul.f32 %v65_v19, %v63_v18  ;;  %s80_s11 = sshll.u32 %s155_s0, 4  ;;  %s82_s14 = sshll.u32 %s173_s1, 4  ;;  %vm72_vm4 = vcmp.lt.s32.totalorder %v70_v32, 256  ;;  %s81_s11 = int_to_ptr.vmem [resolvable:$true] %s80_s11  ;;  %s83_s14 = int_to_ptr.hbm [resolvable:$true] %s82_s14 }
   0xb   :  { %v34_v5 = vsub.f32 %v23_v0, %v33_v4  ;;  %v37_v6 = vsub.f32 %v25_v1, %v33_v4  ;;  %v40_v7 = vsub.f32 %v27_v2, %v33_v4 }
   0xd   :  { %v35_v8 = vmul.f32 1.442695, %v34_v5  ;;  %v38_v9 = vmul.f32 1.442695, %v37_v6  ;;  %v41_v10 = vmul.f32 1.442695, %v40_v7 }
   0xf   :  { %94 = vpow2.f32 %v35_v8 }
  0x10   :  { %96 = vpow2.f32 %v38_v9 }
  0x11   :  { %98 = vpow2.f32 %v41_v10 }
  0x15   :  { %v95_v11 = vpop.eup %94 }
  0x16   :  { %v97_v12 = vpop.eup %96 }
  0x17   :  { %v99_v13 = vpop.eup %98  ;;  %v43_v14 = vadd.f32 %v97_v12, %v95_v11  ;;  %v59_v20 = vsub.f32 %v95_v11, %v97_v12 }
  0x18   :  { %v67_v27 = vmul.f32 %v99_v13, %v66_v22 }
  0x19   :  { %v44_v15 = vadd.f32 %v99_v13, %v43_v14  ;;  %v61_v26 = vmul.f32 %v60_v21, %v59_v20 }
  0x1b   :  { %100 = vrcp.f32 %v44_v15  ;;  %v56_v25 = vand.u32 2147483648, %v44_v15  ;;  %vm50_vm0 = vweird.f32 %v44_v15  ;;  %v54_v29 = vand.u32 2147483647, %v44_v15 }
  0x1c   :  { %v68_v34 = vadd.f32 %v67_v27, %v61_v26 }
  0x1d   :  { %v57_v31 = vor.u32 1.1754944e-38, %v56_v25  ;;  %vm55_vm3 = vcmp.eq.f32.partialorder %v54_v29, 8.507059e+37 }
  0x21   :  { %v101_v23 = vpop.eup %100 }
  0x22   :  { %v46_v24 = vmul.f32 %v101_v23, %v44_v15  ;;  %vm51_vm1 = vweird.f32 %v101_v23 }
  0x23   :  { %vm52_vm2 = vmor %vm50_vm0, %vm51_vm1 }
  0x24   :  { %v47_v28 = vsub.f32 1.0, %v46_v24 }
  0x26   :  { %v48_v30 = vmul.f32 %v101_v23, %v47_v28 }
  0x28   :  { %v49_v33 = vadd.f32 %v101_v23, %v48_v30 }
  0x2a   :  { %v53_v35 = vsel %vm52_vm2, %v101_v23, %v49_v33 }
  0x2b   :  { %v58_v36 = vsel %vm55_vm3, %v57_v31, %v53_v35 }
  0x2c   :  { %v69_v37 = vmul.f32 %v68_v34, %v58_v36 }
  0x2e   :  { %74 = vst.msk [vmem:[#allocation5] sm:$0x3] %vm72_vm4, %v69_v37 }
  0x2f   :  { %85 = dma.vmem_to_hbm [thread:$0]  %s81_s11, 32, %s83_s14, [#allocation4]  }
  0x30   :  { %152 = dma.done.wait [#allocation4], 32  }
  0x31   :  { %153 = vsyncadd [#allocation4], 4294967264 }
  0x32   :  { %90 = vsyncpa [#allocation3], 1 }
  0x33   :  { %91 = vsyncpa [#allocation4], 1 }

</bundles_post_ra>
